<compile_context>
chip_gen: v7x
topology: tpu7x:2x2x1
jax: 0.10.0
libtpu: 0.0.40
codegen_flags: <defaults>
</compile_context>

<pallas_src>
import jax
import jax.numpy as jnp
import numpy as np
from jax.experimental import pallas as pl
from jax.experimental.pallas import tpu as pltpu

# ---------------- configuration (mirrors SimulatedNetwork.__init__) ----------------
C_IN = 16            # cfg['num_inputs']
HIDDEN = 32
C_OUT = 4            # cfg['num_outputs']
LAYER_DIMS = [(C_IN, HIDDEN), (HIDDEN, HIDDEN), (HIDDEN, C_OUT)]
# activations: ReLU, ReLU, None (identity); all layers have bias.
WEIGHT_DTYPE = jnp.bfloat16   # torch.float16 -> bf16 on TPU

# ------------- packed parameter slab geometry (built once at init) ------------------
# Weight slab (bf16): W^T ([n_in, n_out]) blocks stacked along rows, n_out on lanes.
W_ROWS = C_IN + HIDDEN + HIDDEN          # 16 + 32 + 32 = 80 rows
W_COLS = HIDDEN                          # 32 (max n_out)
_W1_R = (0, C_IN)                        # rows  0:16 , cols 0:32
_W2_R = (C_IN, C_IN + HIDDEN)            # rows 16:48 , cols 0:32
_W3_R = (C_IN + HIDDEN, W_ROWS)          # rows 48:80 , cols 0:4
# Bias slab (fp32): one row per layer.
B_ROWS, B_COLS = 8, HIDDEN

BATCH = 128          # demo batch


# ---------------------------------- kernel -----------------------------------------
def mlp_kernel(x_ref, w_ref, b_ref, o_ref):
    # x_ref: [Bb, C_IN] fp32 (native layout; cast to half in-kernel)
    # w_ref: [80, 32] bf16 packed weight slab (pre-transposed per layer)
    # b_ref: [8, 32] fp32 packed bias slab (row per layer)
    # o_ref: [Bb, C_OUT] fp32
    x = x_ref[...].astype(WEIGHT_DTYPE)                       # x.to(weight_dtype)

    # Static slices of the packed slabs (zero-cost; row offsets are 16-aligned).
    w1 = w_ref[_W1_R[0]:_W1_R[1], :]                          # [16, 32]
    w2 = w_ref[_W2_R[0]:_W2_R[1], :]                          # [32, 32]
    w3 = w_ref[_W3_R[0]:_W3_R[1], 0:C_OUT]                    # [32, 4]
    b1 = b_ref[0:1, :]                                        # [1, 32] fp32
    b2 = b_ref[1:2, :]                                        # [1, 32]
    b3 = b_ref[2:3, 0:C_OUT]                                  # [1, 4]

    # Layer 0: Linear(C_IN -> HIDDEN, bias) + ReLU            -> [Bb, HIDDEN]
    z = jnp.dot(x, w1, preferred_element_type=jnp.float32) + b1
    h = jnp.maximum(z, 0.0).astype(WEIGHT_DTYPE)              # half-precision output

    # Layer 1: Linear(HIDDEN -> HIDDEN, bias) + ReLU          -> [Bb, HIDDEN]
    z = jnp.dot(h, w2, preferred_element_type=jnp.float32) + b2
    h = jnp.maximum(z, 0.0).astype(WEIGHT_DTYPE)

    # Layer 2: Linear(HIDDEN -> C_OUT, bias), identity        -> [Bb, C_OUT]
    z = jnp.dot(h, w3, preferred_element_type=jnp.float32) + b3

    # half-precision Linear output, then .to(torch.float32); stored directly [Bb, 4]
    o_ref[...] = z.astype(WEIGHT_DTYPE).astype(jnp.float32)


# --------------------------------- wrapper ------------------------------------------
def _pick_block_b(batch: int) -> int:
    # Large enough to amortize the ~0.35 us/step overhead, small enough that per-block
    # VMEM stays tiny even under v7x's 64 MiB; falls back to one resident block for
    # small / irregular batches (full-extent blocks are exempt from the (8,128) rule).
    for cand in (2048, 1024, 512, 256, 128):
        if batch >= cand and batch % cand == 0:
            return cand
    return batch


@jax.jit
def simulated_network_forward(x, w_slab, b_slab):
    """x: [batch, C_IN] float32.  w_slab: [80, 32] bf16.  b_slab: [8, 32] fp32.
    Returns [batch, C_OUT] float32 (same semantics as SimulatedNetwork.forward)."""
    batch = x.shape[0]
    block_b = _pick_block_b(batch)
    grid = (batch // block_b,)

    return pl.pallas_call(
        mlp_kernel,
        out_shape=jax.ShapeDtypeStruct((batch, C_OUT), jnp.float32),
        grid_spec=pltpu.PrefetchScalarGridSpec(
            num_scalar_prefetch=0,
            grid=grid,
            in_specs=[
                pl.BlockSpec((block_b, C_IN), lambda i: (i, 0)),     # batch tile
                pl.BlockSpec((W_ROWS, W_COLS), lambda i: (0, 0)),    # resident weights
                pl.BlockSpec((B_ROWS, B_COLS), lambda i: (0, 0)),    # resident biases
            ],
            out_specs=pl.BlockSpec((block_b, C_OUT), lambda i: (i, 0)),
        ),
        compiler_params=pltpu.CompilerParams(
            dimension_semantics=("parallel",)),     # shards batch tiles across v7x TCs
    )(x, w_slab, b_slab)


# ------------------------- deterministic parameter init -----------------------------
def init_params(key):
    """Builds the two kernel-native slabs once (plus torch-layout copies for the ref).
    torch.nn.Linear default init: U(-1/sqrt(n_in), 1/sqrt(n_in)) for weight and bias."""
    w_slab = jnp.zeros((W_ROWS, W_COLS), WEIGHT_DTYPE)
    b_slab = jnp.zeros((B_ROWS, B_COLS), jnp.float32)
    raw = []
    row = 0
    for li, (n_in, n_out) in enumerate(LAYER_DIMS):
        kw, kb, key = jax.random.split(key, 3)
        bound = 1.0 / np.sqrt(n_in)
        w = jax.random.uniform(kw, (n_out, n_in), jnp.float32, -bound, bound)
        b = jax.random.uniform(kb, (n_out,), jnp.float32, -bound, bound)
        w_h = w.astype(WEIGHT_DTYPE)                    # half-precision params
        b_h = b.astype(WEIGHT_DTYPE)
        raw.append((w_h, b_h))                          # torch-layout, for the reference
        w_slab = w_slab.at[row:row + n_in, 0:n_out].set(w_h.T)          # store W^T
        b_slab = b_slab.at[li, 0:n_out].set(b_h.astype(jnp.float32))    # fp32 row
        row += n_in
    return w_slab, b_slab, tuple(raw)


# --------------------------------- reference -----------------------------------------
def reference_forward(x, raw_params):
    """Pure-JAX reference with identical dtype handling (x -> half, fp32 accumulate,
    half-precision Linear outputs, final cast to fp32)."""
    h = x.astype(WEIGHT_DTYPE)
    acts = ["relu", "relu", "none"]
    for (w, b), act in zip(raw_params, acts):
        z = (jnp.dot(h.astype(jnp.float32), w.astype(jnp.float32).T)
             + b.astype(jnp.float32)[None, :])
        if act == "relu":
            z = jnp.maximum(z, 0.0)
        h = z.astype(WEIGHT_DTYPE)
    return h.astype(jnp.float32)


if __name__ == "__main__":
    key = jax.random.PRNGKey(0)
    kx, kp = jax.random.split(key)
    x = jax.random.normal(kx, (BATCH, C_IN), jnp.float32)
    w_slab, b_slab, raw_params = init_params(kp)

    out = jax.block_until_ready(simulated_network_forward(x, w_slab, b_slab))
    ref = jax.block_until_ready(reference_forward(x, raw_params))
    np.testing.assert_allclose(np.asarray(out), np.asarray(ref), rtol=5e-2, atol=5e-2)

    assert out.shape == (BATCH, C_OUT) and out.dtype == jnp.float32
    print("KERNEL_OK")
</pallas_src>

<mosaic_0001>
module attributes {stable_mosaic.version = 11 : i64} {
  func.func @mlp_kernel(%arg0: i32, %arg1: memref<128x16xf32, #tpu.memory_space<vmem>>, %arg2: memref<80x32xbf16, #tpu.memory_space<vmem>>, %arg3: memref<8x32xf32, #tpu.memory_space<vmem>>, %arg4: memref<128x4xf32, #tpu.memory_space<vmem>>) attributes {dimension_semantics = [#tpu.dimension_semantics<parallel>], iteration_bounds = array<i64: 1>, scalar_prefetch = 0 : i64, scratch_operands = 0 : i64, tpu.core_type = #tpu.core_type<tc>, window_params = [{transform_indices = @transform_0, window_bounds = array<i64: 128, 16>}, {pipeline_mode = #tpu.pipeline_mode<synchronous>, transform_indices = @transform_1, window_bounds = array<i64: 80, 32>}, {pipeline_mode = #tpu.pipeline_mode<synchronous>, transform_indices = @transform_2, window_bounds = array<i64: 8, 32>}, {transform_indices = @transform_3, window_bounds = array<i64: 128, 4>}]} {
    %c0 = arith.constant 0 : index
    %c0_0 = arith.constant 0 : index
    %0 = vector.load %arg1[%c0, %c0_0] : memref<128x16xf32, #tpu.memory_space<vmem>>, vector<128x16xf32>
    %1 = arith.truncf %0 : vector<128x16xf32> to vector<128x16xbf16>
    %c0_1 = arith.constant 0 : index
    %c0_2 = arith.constant 0 : index
    %2 = vector.load %arg2[%c0_1, %c0_2] : memref<80x32xbf16, #tpu.memory_space<vmem>>, vector<16x32xbf16>
    %c16 = arith.constant 16 : index
    %c0_3 = arith.constant 0 : index
    %3 = vector.load %arg2[%c16, %c0_3] : memref<80x32xbf16, #tpu.memory_space<vmem>>, vector<32x32xbf16>
    %c48 = arith.constant 48 : index
    %c0_4 = arith.constant 0 : index
    %4 = vector.load %arg2[%c48, %c0_4] : memref<80x32xbf16, #tpu.memory_space<vmem>>, vector<32x4xbf16>
    %c0_5 = arith.constant 0 : index
    %c0_6 = arith.constant 0 : index
    %5 = vector.load %arg3[%c0_5, %c0_6] : memref<8x32xf32, #tpu.memory_space<vmem>>, vector<1x32xf32>
    %c1 = arith.constant 1 : index
    %c0_7 = arith.constant 0 : index
    %6 = vector.load %arg3[%c1, %c0_7] : memref<8x32xf32, #tpu.memory_space<vmem>>, vector<1x32xf32>
    %c2 = arith.constant 2 : index
    %c0_8 = arith.constant 0 : index
    %7 = vector.load %arg3[%c2, %c0_8] : memref<8x32xf32, #tpu.memory_space<vmem>>, vector<1x4xf32>
    %cst = arith.constant dense<0.000000e+00> : vector<128x32xf32>
    %8 = tpu.matmul %1, %2, %cst {dimension_numbers = #tpu.dot_dimension_numbers<[1], [0], [0], [1], [0, 0, 1, 1], [], []>} : vector<128x16xbf16>, vector<16x32xbf16>, vector<128x32xf32> -> vector<128x32xf32>
    %9 = vector.broadcast %5 : vector<1x32xf32> to vector<128x32xf32>
    %10 = arith.addf %8, %9 : vector<128x32xf32>
    %cst_9 = arith.constant 0.000000e+00 : f32
    %11 = vector.broadcast %cst_9 : f32 to vector<128x32xf32>
    %12 = arith.maximumf %10, %11 : vector<128x32xf32>
    %13 = arith.truncf %12 : vector<128x32xf32> to vector<128x32xbf16>
    %cst_10 = arith.constant dense<0.000000e+00> : vector<128x32xf32>
    %14 = tpu.matmul %13, %3, %cst_10 {dimension_numbers = #tpu.dot_dimension_numbers<[1], [0], [0], [1], [0, 0, 1, 1], [], []>} : vector<128x32xbf16>, vector<32x32xbf16>, vector<128x32xf32> -> vector<128x32xf32>
    %15 = vector.broadcast %6 : vector<1x32xf32> to vector<128x32xf32>
    %16 = arith.addf %14, %15 : vector<128x32xf32>
    %cst_11 = arith.constant 0.000000e+00 : f32
    %17 = vector.broadcast %cst_11 : f32 to vector<128x32xf32>
    %18 = arith.maximumf %16, %17 : vector<128x32xf32>
    %19 = arith.truncf %18 : vector<128x32xf32> to vector<128x32xbf16>
    %cst_12 = arith.constant dense<0.000000e+00> : vector<128x4xf32>
    %20 = tpu.matmul %19, %4, %cst_12 {dimension_numbers = #tpu.dot_dimension_numbers<[1], [0], [0], [1], [0, 0, 1, 1], [], []>} : vector<128x32xbf16>, vector<32x4xbf16>, vector<128x4xf32> -> vector<128x4xf32>
    %21 = vector.broadcast %7 : vector<1x4xf32> to vector<128x4xf32>
    %22 = arith.addf %20, %21 : vector<128x4xf32>
    %23 = arith.truncf %22 : vector<128x4xf32> to vector<128x4xbf16>
    %24 = arith.extf %23 : vector<128x4xbf16> to vector<128x4xf32>
    %c0_13 = arith.constant 0 : index
    %c0_14 = arith.constant 0 : index
    %25 = vector.load %arg4[%c0_13, %c0_14] : memref<128x4xf32, #tpu.memory_space<vmem>>, vector<128x4xf32>
    tpu.vector_store %arg4[%c0_13, %c0_14], %24 {strides = array<i32>} : memref<128x4xf32, #tpu.memory_space<vmem>>, vector<128x4xf32>,
    return
  }
  func.func @transform_0(%arg0: i32) -> (i32, i32) {
    %c0_i32 = arith.constant 0 : i32
    %c0_i32_0 = arith.constant 0 : i32
    return %arg0, %c0_i32 : i32, i32
  }
  func.func @transform_1(%arg0: i32) -> (i32, i32) {
    %c0_i32 = arith.constant 0 : i32
    %c0_i32_0 = arith.constant 0 : i32
    %c0_i32_1 = arith.constant 0 : i32
    return %c0_i32, %c0_i32_0 : i32, i32
  }
  func.func @transform_2(%arg0: i32) -> (i32, i32) {
    %c0_i32 = arith.constant 0 : i32
    %c0_i32_0 = arith.constant 0 : i32
    %c0_i32_1 = arith.constant 0 : i32
    return %c0_i32, %c0_i32_0 : i32, i32
  }
  func.func @transform_3(%arg0: i32) -> (i32, i32) {
    %c0_i32 = arith.constant 0 : i32
    %c0_i32_0 = arith.constant 0 : i32
    return %arg0, %c0_i32 : i32, i32
  }
}

</mosaic_0001>

<bundles_post_ra>
// kernel: simulated_network_forward.1
= control target key start
LH: loop header
LB: loop body
LE: loop exit
PB: predicated region body
PF: predicated region fallthrough
CT: control target
= control target key end

     0   :  { %vm62_vm0 = vcmask 130048   ;;  %vm224_vm1 = vcmask 261120   ;;  %vm531_vm2 = vcmask 31744   ;;  %s876_s1 = inlined_call_operand.vmem [shape: bf16[80,32], index: 1, kind: input, shape index: {}]   ;;  %s877_s0 = inlined_call_operand.vmem [shape: f32[128,16], index: 0, kind: input, shape index: {}]   ;;  %s878_s2 = inlined_call_operand.vmem [shape: f32[8,32], index: 2, kind: input, shape index: {}]   ;;  %s879_s3 = inlined_call_operand.vmem [shape: f32[128,4], index: 3, kind: output, shape index: {}]  }
   0x1   :  { %v673_v0 = vld [vmem:[%s876_s1] sm:$0xff]   ;;  %v16_v2 = vld [vmem:[%s877_s0 + $0x8] sm:$0xff]  ;;  %v17_v3 = vld [vmem:[%s877_s0 + $0x10] sm:$0xff] }
   0x2   :  { %v15_v1 = vld [vmem:[%s877_s0] sm:$0xff]  ;;  %613 = vmatprep.subr.bf16.mxu0 %v673_v0  ;;  %v18_v5 = vld [vmem:[%s877_s0 + $0x18] sm:$0xff]  ;;  %v20_v7 = vld [vmem:[%s877_s0 + $0x28] sm:$0xff]  ;;  %671 = vmatprep.subr.bf16.mxu1 %v673_v0 }
   0x3   :  { %v31_v4 = vpack.c.bf16 %v16_v2, %v15_v1  ;;  %v19_v6 = vld [vmem:[%s877_s0 + $0x20] sm:$0xff]  ;;  %614 = vmatpush3.bf16.msra.mxu0 %v673_v0  ;;  %v32_v8 = vpack.c.bf16 %v18_v5, %v17_v3  ;;  %672 = vmatpush3.bf16.msra.mxu1 %v673_v0  ;;  %v24_v11 = vld [vmem:[%s877_s0 + $0x48] sm:$0xff]  ;;  %v25_v12 = vld [vmem:[%s877_s0 + $0x50] sm:$0xff] }
   0x4   :  { %v33_v9 = vpack.c.bf16 %v20_v7, %v19_v6  ;;  %v23_v10 = vld [vmem:[%s877_s0 + $0x40] sm:$0xff]  ;;  %v26_v13 = vld [vmem:[%s877_s0 + $0x58] sm:$0xff]  ;;  %v21_v14 = vld [vmem:[%s877_s0 + $0x30] sm:$0xff] }
   0x5   :  { %615 = vmatprep.mubr.msk.bf16.mxu0 %vm62_vm0, %v31_v4  ;;  %v35_v15 = vpack.c.bf16 %v24_v11, %v23_v10  ;;  %v36_v16 = vpack.c.bf16 %v26_v13, %v25_v12  ;;  %v27_v17 = vld [vmem:[%s877_s0 + $0x60] sm:$0xff]  ;;  %v28_v18 = vld [vmem:[%s877_s0 + $0x68] sm:$0xff]  ;;  %v22_v19 = vld [vmem:[%s877_s0 + $0x38] sm:$0xff] }
   0x6   :  { %616 = vmatmul.mubr.msk.bf16.vlgmr.msra.gmra.mrb[0].mxu0 %vm62_vm0, %v32_v8  ;;  %v37_v20 = vpack.c.bf16 %v28_v18, %v27_v17  ;;  %v674_v21 = vld [vmem:[%s876_s1 + $0x8] sm:$0xff]   ;;  %v29_v22 = vld [vmem:[%s877_s0 + $0x70] sm:$0xff]  ;;  %v30_v23 = vld [vmem:[%s877_s0 + $0x78] sm:$0xff]  ;;  %v34_v24 = vpack.c.bf16 %v22_v19, %v21_v14 }
   0x7   :  { %619 = vmatprep.mubr.msk.bf16.mxu0 %vm62_vm0, %v33_v9  ;;  %623 = vmatprep.mubr.msk.bf16.mxu1 %vm62_vm0, %v35_v15  ;;  %v38_v25 = vpack.c.bf16 %v30_v23, %v29_v22  ;;  %v675_v26 = vld [vmem:[%s876_s1 + $0x10] sm:$0xff]   ;;  %v676_v27 = vld [vmem:[%s876_s1 + $0x18] sm:$0xff]   ;;  %v552_v28 = vld [vmem:[%s878_s2] ss:$0 sm:$0xff] }
   0x8   :  { %624 = vmatmul.mubr.msk.bf16.vlgmr.msra.gmra.mrb[0].mxu1 %vm62_vm0, %v36_v16  ;;  %631 = vmatprep.subr.bf16.mxu1 %v674_v21  ;;  %v562_v22 = vld [vmem:[%s878_s2 + $0x1] ss:$0 sm:$0xff] }
   0x9   :  { %627 = vmatprep.mubr.msk.bf16.mxu1 %vm62_vm0, %v37_v20  ;;  %632 = vmatpush3.bf16.msra.mxu1 %v674_v21  ;;  %v677_v21 = vld [vmem:[%s876_s1 + $0x20] sm:$0xff]  }
   0xa   :  { %633 = vmatprep.subr.bf16.mxu1 %v675_v26  ;;  %651 = vmatprep.subr.bf16.mxu0 %v676_v27 }
   0xb   :  { %652 = vmatpush3.bf16.msra.mxu0 %v676_v27 }
   0xc   :  { %653 = vmatprep.subr.bf16.mxu0 %v677_v21 }
   0xd   :  { %634 = vmatpush3.bf16.msra.mxu1 %v675_v26 }
   0xe   :  { %620 = vmatmul.mubr.msk.bf16.gmra.mrb[4].mxu0 %vm62_vm0, %v34_v24 }
   0xf   :  { %654 = vmatpush3.bf16.msra.mxu0 %v677_v21 }
  0x10   :  { %628 = vmatmul.mubr.msk.bf16.gmra.mrb[4].mxu1 %vm62_vm0, %v38_v25 }
  0xd9   :  { %v617_v29 = vpop.f32.mrb[0].mxu0 }
  0xda   :  { %v130_v30 = vadd.f32 %v617_v29, %v552_v28  ;;  %v121_v31 = vpop.f32.mrb[1].mxu0 }
  0xdb   :  { %v122_v32 = vadd.f32 %v552_v28, %v121_v31  ;;  %v618_v33 = vpop.f32.mrb[2].mxu0  ;;  %v625_v34 = vpop.f32.mrb[0].mxu1 }
  0xdc   :  { %v133_v35 = vadd.f32 %v618_v33, %v552_v28  ;;  %v124_v36 = vpop.f32.mrb[3].mxu0  ;;  %v162_v37 = vadd.f32 %v625_v34, %v552_v28  ;;  %v153_v38 = vpop.f32.mrb[1].mxu1  ;;  %v186_v42 = vmax.f32 %v130_v30, 0.0 }
  0xdd   :  { %v125_v39 = vadd.f32 %v552_v28, %v124_v36  ;;  %v154_v40 = vadd.f32 %v552_v28, %v153_v38  ;;  %v626_v41 = vpop.f32.mrb[2].mxu1  ;;  %v184_v47 = vmax.f32 %v122_v32, 0.0 }
  0xde   :  { %v187_v43 = vmax.f32 %v133_v35, 0.0  ;;  %v194_v44 = vmax.f32 %v162_v37, 0.0  ;;  %v165_v45 = vadd.f32 %v626_v41, %v552_v28  ;;  %v156_v46 = vpop.f32.mrb[3].mxu1 }
  0xdf   :  { %v185_v48 = vmax.f32 %v125_v39, 0.0  ;;  %v192_v49 = vmax.f32 %v154_v40, 0.0  ;;  %v157_v50 = vadd.f32 %v552_v28, %v156_v46 }
  0xe0   :  { %v201_v51 = vpack.c.bf16 %v187_v43, %v186_v42  ;;  %v195_v52 = vmax.f32 %v165_v45, 0.0 }
  0xe1   :  { %v200_v53 = vpack.c.bf16 %v185_v48, %v184_v47  ;;  %v621_v54 = vpop.f32.mrb[4].mxu0  ;;  %v193_v55 = vmax.f32 %v157_v50, 0.0 }
  0xe2   :  { %v146_v56 = vadd.f32 %v621_v54, %v552_v28  ;;  %v137_v57 = vpop.f32.mrb[5].mxu0  ;;  %v205_v58 = vpack.c.bf16 %v195_v52, %v194_v44 }
  0xe3   :  { %v138_v59 = vadd.f32 %v552_v28, %v137_v57  ;;  %v622_v60 = vpop.f32.mrb[6].mxu0  ;;  %635 = vmatprep.mubr.msk.bf16.mxu1 %vm224_vm1, %v200_v53  ;;  %v204_v61 = vpack.c.bf16 %v193_v55, %v192_v49  ;;  %v629_v62 = vpop.f32.mrb[4].mxu1 }
  0xe4   :  { %v149_v63 = vadd.f32 %v622_v60, %v552_v28  ;;  %v140_v0 = vpop.f32.mrb[7].mxu0  ;;  %636 = vmatmul.mubr.msk.bf16.vlgmr.msra.gmra.mrb[8].mxu1 %vm224_vm1, %v201_v51  ;;  %v178_v1 = vadd.f32 %v629_v62, %v552_v28  ;;  %v169_v2 = vpop.f32.mrb[5].mxu1  ;;  %v190_v6 = vmax.f32 %v146_v56, 0.0 }
  0xe5   :  { %v141_v3 = vadd.f32 %v552_v28, %v140_v0  ;;  %v170_v4 = vadd.f32 %v552_v28, %v169_v2  ;;  %v630_v5 = vpop.f32.mrb[6].mxu1  ;;  %v188_v11 = vmax.f32 %v138_v59, 0.0 }
  0xe6   :  { %v191_v7 = vmax.f32 %v149_v63, 0.0  ;;  %v198_v8 = vmax.f32 %v178_v1, 0.0  ;;  %v181_v9 = vadd.f32 %v630_v5, %v552_v28  ;;  %v172_v10 = vpop.f32.mrb[7].mxu1 }
  0xe7   :  { %v189_v12 = vmax.f32 %v141_v3, 0.0  ;;  %v196_v13 = vmax.f32 %v170_v4, 0.0  ;;  %v173_v14 = vadd.f32 %v552_v28, %v172_v10 }
  0xe8   :  { %v203_v15 = vpack.c.bf16 %v191_v7, %v190_v6  ;;  %v199_v16 = vmax.f32 %v181_v9, 0.0 }
  0xe9   :  { %v202_v17 = vpack.c.bf16 %v189_v12, %v188_v11  ;;  %v197_v18 = vmax.f32 %v173_v14, 0.0 }
  0xea   :  { %v207_v19 = vpack.c.bf16 %v199_v16, %v198_v8  ;;  %v794_v16 = vld [vmem:[%s878_s2 + $0x2] ss:$0 sm:$0xff] }
  0xeb   :  { %639 = vmatprep.mubr.msk.bf16.mxu1 %vm224_vm1, %v202_v17  ;;  %v206_v20 = vpack.c.bf16 %v197_v18, %v196_v13 }
  0xec   :  { %640 = vmatmul.mubr.msk.bf16.gmra.mrb[12].mxu1 %vm224_vm1, %v203_v15 }
  0xed   :  { %643 = vmatprep.mubr.msk.bf16.mxu1 %vm224_vm1, %v204_v61 }
  0xf4   :  { %644 = vmatmul.mubr.msk.bf16.gmra.mrb[16].mxu1 %vm224_vm1, %v205_v58 }
  0xf5   :  { %647 = vmatprep.mubr.msk.bf16.mxu1 %vm224_vm1, %v206_v20 }
  0xfc   :  { %648 = vmatmul.mubr.msk.bf16.gmra.mrb[20].mxu1 %vm224_vm1, %v207_v19 }
 0x1b7   :  { %v637_v23 = vpop.f32.mrb[8].mxu1 }
 0x1b8   :  { %v292_v24 = vadd.f32 %v637_v23, %v562_v22  ;;  %v283_v25 = vpop.f32.mrb[9].mxu1 }
 0x1b9   :  { %v284_v26 = vadd.f32 %v562_v22, %v283_v25  ;;  %v638_v27 = vpop.f32.mrb[10].mxu1 }
 0x1ba   :  { %v295_v28 = vadd.f32 %v638_v27, %v562_v22  ;;  %v286_v29 = vpop.f32.mrb[11].mxu1  ;;  %v348_v31 = vmax.f32 %v292_v24, 0.0 }
 0x1bb   :  { %v287_v30 = vadd.f32 %v562_v22, %v286_v29  ;;  %v346_v33 = vmax.f32 %v284_v26, 0.0 }
 0x1bc   :  { %v349_v32 = vmax.f32 %v295_v28, 0.0 }
 0x1bd   :  { %v347_v34 = vmax.f32 %v287_v30, 0.0 }
 0x1be   :  { %v363_v35 = vpack.c.bf16 %v349_v32, %v348_v31 }
 0x1bf   :  { %v362_v36 = vpack.c.bf16 %v347_v34, %v346_v33  ;;  %v641_v37 = vpop.f32.mrb[12].mxu1 }
 0x1c0   :  { %v308_v38 = vadd.f32 %v641_v37, %v562_v22  ;;  %v299_v39 = vpop.f32.mrb[13].mxu1 }
 0x1c1   :  { %v300_v40 = vadd.f32 %v562_v22, %v299_v39  ;;  %v642_v41 = vpop.f32.mrb[14].mxu1  ;;  %655 = vmatprep.mubr.msk.bf16.mxu0 %vm224_vm1, %v362_v36 }
 0x1c2   :  { %v311_v42 = vadd.f32 %v642_v41, %v562_v22  ;;  %v302_v43 = vpop.f32.mrb[15].mxu1  ;;  %656 = vmatmul.mubr.msk.bf16.vlgmr.msra.gmra.mrb[8].mxu0 %vm224_vm1, %v363_v35  ;;  %v352_v45 = vmax.f32 %v308_v38, 0.0 }
 0x1c3   :  { %v303_v44 = vadd.f32 %v562_v22, %v302_v43  ;;  %v350_v47 = vmax.f32 %v300_v40, 0.0 }
 0x1c4   :  { %v353_v46 = vmax.f32 %v311_v42, 0.0 }
 0x1c5   :  { %v351_v48 = vmax.f32 %v303_v44, 0.0 }
 0x1c6   :  { %v365_v49 = vpack.c.bf16 %v353_v46, %v352_v45 }
 0x1c7   :  { %v364_v50 = vpack.c.bf16 %v351_v48, %v350_v47  ;;  %v645_v51 = vpop.f32.mrb[16].mxu1 }
 0x1c8   :  { %v324_v52 = vadd.f32 %v645_v51, %v562_v22  ;;  %v315_v53 = vpop.f32.mrb[17].mxu1 }
 0x1c9   :  { %v316_v54 = vadd.f32 %v562_v22, %v315_v53  ;;  %v646_v55 = vpop.f32.mrb[18].mxu1  ;;  %659 = vmatprep.mubr.msk.bf16.mxu0 %vm224_vm1, %v364_v50 }
 0x1ca   :  { %v327_v56 = vadd.f32 %v646_v55, %v562_v22  ;;  %v318_v57 = vpop.f32.mrb[19].mxu1  ;;  %660 = vmatmul.mubr.msk.bf16.gmra.mrb[12].mxu0 %vm224_vm1, %v365_v49  ;;  %v356_v59 = vmax.f32 %v324_v52, 0.0 }
 0x1cb   :  { %v319_v58 = vadd.f32 %v562_v22, %v318_v57  ;;  %v354_v61 = vmax.f32 %v316_v54, 0.0 }
 0x1cc   :  { %v357_v60 = vmax.f32 %v327_v56, 0.0 }
 0x1cd   :  { %v355_v62 = vmax.f32 %v319_v58, 0.0 }
 0x1ce   :  { %v367_v63 = vpack.c.bf16 %v357_v60, %v356_v59 }
 0x1cf   :  { %v366_v0 = vpack.c.bf16 %v355_v62, %v354_v61  ;;  %v649_v1 = vpop.f32.mrb[20].mxu1 }
 0x1d0   :  { %v340_v2 = vadd.f32 %v649_v1, %v562_v22  ;;  %v331_v3 = vpop.f32.mrb[21].mxu1 }
 0x1d1   :  { %v332_v4 = vadd.f32 %v562_v22, %v331_v3  ;;  %v650_v5 = vpop.f32.mrb[22].mxu1  ;;  %663 = vmatprep.mubr.msk.bf16.mxu0 %vm224_vm1, %v366_v0 }
 0x1d2   :  { %v343_v6 = vadd.f32 %v650_v5, %v562_v22  ;;  %v334_v7 = vpop.f32.mrb[23].mxu1  ;;  %664 = vmatmul.mubr.msk.bf16.gmra.mrb[16].mxu0 %vm224_vm1, %v367_v63  ;;  %v360_v9 = vmax.f32 %v340_v2, 0.0 }
 0x1d3   :  { %v335_v8 = vadd.f32 %v562_v22, %v334_v7  ;;  %v358_v11 = vmax.f32 %v332_v4, 0.0 }
 0x1d4   :  { %v361_v10 = vmax.f32 %v343_v6, 0.0 }
 0x1d5   :  { %v359_v12 = vmax.f32 %v335_v8, 0.0 }
 0x1d6   :  { %v369_v13 = vpack.c.bf16 %v361_v10, %v360_v9 }
 0x1d7   :  { %v368_v14 = vpack.c.bf16 %v359_v12, %v358_v11 }
 0x1d9   :  { %667 = vmatprep.mubr.msk.bf16.mxu0 %vm224_vm1, %v368_v14 }
 0x1da   :  { %668 = vmatmul.mubr.msk.bf16.gmra.mrb[20].mxu0 %vm224_vm1, %v369_v13 }
 0x295   :  { %v657_v15 = vpop.f32.mrb[8].mxu0 }
 0x296   :  { %v444_v17 = vpop.f32.mrb[9].mxu0  ;;  %v453_v19 = vadd.f32 %v657_v15, %v794_v16 }
 0x297   :  { %v658_v18 = vpop.f32.mrb[10].mxu0  ;;  %v445_v22 = vadd.f32 %v794_v16, %v444_v17 }
 0x298   :  { %v456_v20 = vadd.f32 %v658_v18, %v794_v16  ;;  %v447_v21 = vpop.f32.mrb[11].mxu0 }
 0x299   :  { %v448_v23 = vadd.f32 %v794_v16, %v447_v21 }
 0x29a   :  { %v508_v24 = vpack.c.bf16 %v456_v20, %v453_v19 }
 0x29b   :  { %v507_v25 = vpack.c.bf16 %v448_v23, %v445_v22 }
 0x29c   :  { %v517_v26 = vunpack.c.l.bf16 %v508_v24  ;;  %v518_v27 = vunpack.c.h.bf16 %v508_v24 }
 0x29d   :  { %v515_v28 = vunpack.c.l.bf16 %v507_v25  ;;  %v516_v29 = vunpack.c.h.bf16 %v507_v25  ;;  %v661_v30 = vpop.f32.mrb[12].mxu0 }
 0x29e   :  { %534 = vst.msk [vmem:[%s879_s3 + $0x10] sm:$0xff] %vm531_vm2, %v517_v26  ;;  %535 = vst.msk [vmem:[%s879_s3 + $0x18] sm:$0xff] %vm531_vm2, %v518_v27  ;;  %v460_v31 = vpop.f32.mrb[13].mxu0  ;;  %v469_v33 = vadd.f32 %v661_v30, %v794_v16 }
 0x29f   :  { %532 = vst.msk [vmem:[%s879_s3] sm:$0xff] %vm531_vm2, %v515_v28  ;;  %533 = vst.msk [vmem:[%s879_s3 + $0x8] sm:$0xff] %vm531_vm2, %v516_v29  ;;  %v662_v32 = vpop.f32.mrb[14].mxu0  ;;  %v461_v36 = vadd.f32 %v794_v16, %v460_v31 }
 0x2a0   :  { %v472_v34 = vadd.f32 %v662_v32, %v794_v16  ;;  %v463_v35 = vpop.f32.mrb[15].mxu0 }
 0x2a1   :  { %v464_v37 = vadd.f32 %v794_v16, %v463_v35 }
 0x2a2   :  { %v510_v38 = vpack.c.bf16 %v472_v34, %v469_v33 }
 0x2a3   :  { %v509_v39 = vpack.c.bf16 %v464_v37, %v461_v36 }
 0x2a4   :  { %v521_v40 = vunpack.c.l.bf16 %v510_v38  ;;  %v522_v41 = vunpack.c.h.bf16 %v510_v38 }
 0x2a5   :  { %v519_v42 = vunpack.c.l.bf16 %v509_v39  ;;  %v520_v43 = vunpack.c.h.bf16 %v509_v39  ;;  %v665_v44 = vpop.f32.mrb[16].mxu0 }
 0x2a6   :  { %538 = vst.msk [vmem:[%s879_s3 + $0x30] sm:$0xff] %vm531_vm2, %v521_v40  ;;  %539 = vst.msk [vmem:[%s879_s3 + $0x38] sm:$0xff] %vm531_vm2, %v522_v41  ;;  %v476_v45 = vpop.f32.mrb[17].mxu0  ;;  %v485_v47 = vadd.f32 %v665_v44, %v794_v16 }
 0x2a7   :  { %536 = vst.msk [vmem:[%s879_s3 + $0x20] sm:$0xff] %vm531_vm2, %v519_v42  ;;  %537 = vst.msk [vmem:[%s879_s3 + $0x28] sm:$0xff] %vm531_vm2, %v520_v43  ;;  %v666_v46 = vpop.f32.mrb[18].mxu0  ;;  %v477_v50 = vadd.f32 %v794_v16, %v476_v45 }
 0x2a8   :  { %v488_v48 = vadd.f32 %v666_v46, %v794_v16  ;;  %v479_v49 = vpop.f32.mrb[19].mxu0 }
 0x2a9   :  { %v480_v51 = vadd.f32 %v794_v16, %v479_v49 }
 0x2aa   :  { %v512_v52 = vpack.c.bf16 %v488_v48, %v485_v47 }
 0x2ab   :  { %v511_v53 = vpack.c.bf16 %v480_v51, %v477_v50 }
 0x2ac   :  { %v525_v54 = vunpack.c.l.bf16 %v512_v52  ;;  %v526_v55 = vunpack.c.h.bf16 %v512_v52 }
 0x2ad   :  { %v523_v56 = vunpack.c.l.bf16 %v511_v53  ;;  %v524_v57 = vunpack.c.h.bf16 %v511_v53  ;;  %v669_v58 = vpop.f32.mrb[20].mxu0 }
 0x2ae   :  { %542 = vst.msk [vmem:[%s879_s3 + $0x50] sm:$0xff] %vm531_vm2, %v525_v54  ;;  %543 = vst.msk [vmem:[%s879_s3 + $0x58] sm:$0xff] %vm531_vm2, %v526_v55  ;;  %v492_v59 = vpop.f32.mrb[21].mxu0  ;;  %v501_v61 = vadd.f32 %v669_v58, %v794_v16 }
 0x2af   :  { %540 = vst.msk [vmem:[%s879_s3 + $0x40] sm:$0xff] %vm531_vm2, %v523_v56  ;;  %541 = vst.msk [vmem:[%s879_s3 + $0x48] sm:$0xff] %vm531_vm2, %v524_v57  ;;  %v670_v60 = vpop.f32.mrb[22].mxu0  ;;  %v493_v0 = vadd.f32 %v794_v16, %v492_v59 }
 0x2b0   :  { %v504_v62 = vadd.f32 %v670_v60, %v794_v16  ;;  %v495_v63 = vpop.f32.mrb[23].mxu0 }
 0x2b1   :  { %v496_v1 = vadd.f32 %v794_v16, %v495_v63 }
 0x2b2   :  { %v514_v2 = vpack.c.bf16 %v504_v62, %v501_v61 }
 0x2b3   :  { %v513_v3 = vpack.c.bf16 %v496_v1, %v493_v0 }
 0x2b4   :  { %v529_v4 = vunpack.c.l.bf16 %v514_v2  ;;  %v530_v5 = vunpack.c.h.bf16 %v514_v2 }
 0x2b5   :  { %v527_v6 = vunpack.c.l.bf16 %v513_v3  ;;  %v528_v7 = vunpack.c.h.bf16 %v513_v3 }
 0x2b6   :  { %546 = vst.msk [vmem:[%s879_s3 + $0x70] sm:$0xff] %vm531_vm2, %v529_v4  ;;  %547 = vst.msk [vmem:[%s879_s3 + $0x78] sm:$0xff] %vm531_vm2, %v530_v5 }
 0x2b7   :  { %544 = vst.msk [vmem:[%s879_s3 + $0x60] sm:$0xff] %vm531_vm2, %v527_v6  ;;  %545 = vst.msk [vmem:[%s879_s3 + $0x68] sm:$0xff] %vm531_vm2, %v528_v7 }

</bundles_post_ra>
